<compile_context>
chip_gen: v5e
topology: v5e:2x2
jax: 0.10.0
libtpu: 0.0.40
codegen_flags: <defaults>
</compile_context>

<pallas_src>
import functools

import jax
import jax.numpy as jnp
from jax.experimental import pallas as pl
from jax.experimental.pallas import tpu as pltpu


# ----------------------------------------------------------------------------
# Helpers
# ----------------------------------------------------------------------------
def _tile(dim, target, align):
    """Largest aligned tile <= target that divides dim, else the full dim."""
    if dim <= target:
        return dim
    t = (target // align) * align
    while t >= align:
        if dim % t == 0:
            return t
        t -= align
    return dim


def _derive_vmem_limit():
    cap = None
    try:
        info = pltpu.get_tpu_info()
        cap = getattr(info, "vmem_capacity_bytes", None)
    except Exception:
        cap = None
    if not cap:
        cap = 64 << 20            # conservative fallback: v7x physical VMEM
    return int(min(cap * 3 // 4, 100 << 20))


_VMEM_LIMIT = _derive_vmem_limit()


# ----------------------------------------------------------------------------
# Kernels
# ----------------------------------------------------------------------------
def _matmul_nok_kernel(x_ref, w_ref, b_ref, o_ref, *, activation):
    """Single-K-block matmul: y = act(x @ w + b) written straight to o_ref."""
    y = jnp.dot(x_ref[...], w_ref[...], preferred_element_type=jnp.float32)
    y = y + b_ref[...]
    if activation == "gelu":
        # TODO(synk): HF BERT default 'gelu' is the exact erf form; tanh approx used here.
        y = jax.nn.gelu(y, approximate=True)
    elif activation == "tanh":
        y = jnp.tanh(y)
    o_ref[...] = y.astype(o_ref.dtype)


def _matmul_kernel(x_ref, w_ref, b_ref, o_ref, acc_ref, *, activation):
    """K-tiled fallback (only used when K does not fit in one block)."""
    @pl.when(pl.program_id(2) == 0)
    def _zero():
        acc_ref[...] = jnp.zeros_like(acc_ref)

    acc_ref[...] += jnp.dot(x_ref[...], w_ref[...],
                            preferred_element_type=jnp.float32)

    @pl.when(pl.program_id(2) == pl.num_programs(2) - 1)
    def _store():
        y = acc_ref[...] + b_ref[...]
        if activation == "gelu":
            y = jax.nn.gelu(y, approximate=True)
        elif activation == "tanh":
            y = jnp.tanh(y)
        o_ref[...] = y.astype(o_ref.dtype)


def _matmul_add_ln_nok_kernel(x_ref, w_ref, b_ref, r_ref, g_ref, bb_ref, o_ref,
                              *, eps):
    """out = LayerNorm(x @ w + b + residual), single K block (weight resident)."""
    y = jnp.dot(x_ref[...], w_ref[...], preferred_element_type=jnp.float32)
    y = y + b_ref[...] + r_ref[...].astype(jnp.float32)
    mu = jnp.mean(y, axis=-1, keepdims=True)
    yc = y - mu
    var = jnp.mean(yc * yc, axis=-1, keepdims=True)
    o_ref[...] = (yc * jax.lax.rsqrt(var + eps) * g_ref[...]
                  + bb_ref[...]).astype(o_ref.dtype)


def _matmul_add_ln_kernel(x_ref, w_ref, b_ref, r_ref, g_ref, bb_ref, o_ref,
                          acc_ref, *, eps):
    """K-tiled fallback of the fused residual+LayerNorm matmul."""
    @pl.when(pl.program_id(1) == 0)
    def _zero():
        acc_ref[...] = jnp.zeros_like(acc_ref)

    acc_ref[...] += jnp.dot(x_ref[...], w_ref[...],
                            preferred_element_type=jnp.float32)

    @pl.when(pl.program_id(1) == pl.num_programs(1) - 1)
    def _store():
        y = acc_ref[...] + b_ref[...] + r_ref[...].astype(jnp.float32)
        mu = jnp.mean(y, axis=-1, keepdims=True)
        yc = y - mu
        var = jnp.mean(yc * yc, axis=-1, keepdims=True)
        o_ref[...] = (yc * jax.lax.rsqrt(var + eps) * g_ref[...]
                      + bb_ref[...]).astype(o_ref.dtype)


def _layernorm_kernel(x_ref, g_ref, b_ref, o_ref, *, eps):
    x = x_ref[...].astype(jnp.float32)
    mu = jnp.mean(x, axis=-1, keepdims=True)
    xc = x - mu
    var = jnp.mean(xc * xc, axis=-1, keepdims=True)
    o_ref[...] = (xc * jax.lax.rsqrt(var + eps) * g_ref[...]
                  + b_ref[...]).astype(o_ref.dtype)


def _attn_kernel(q_ref, kv_ref, m_ref, o_ref, *, heads, head_dim, hidden,
                 scale, store_group):
    """Per (batch, query-block) attention over all heads.

    q_ref : (1, tq, 3H) query-row slab of fused qkv
    kv_ref: (1, S,  3H) full-sequence slab (resident across query blocks)
    m_ref : (1, 1,  S)  additive key mask
    """
    qq = q_ref[0]                        # (tq, 3H) bf16
    kv = kv_ref[0]                       # (S, 3H)  bf16
    mask = m_ref[0]                      # (1, S)   f32
    dh = head_dim
    pending = []
    for h in range(heads):               # static unroll
        q = qq[:, h * dh:(h + 1) * dh]
        k = kv[:, hidden + h * dh:hidden + (h + 1) * dh]
        v = kv[:, 2 * hidden + h * dh:2 * hidden + (h + 1) * dh]
        # q.k^T without materializing a transpose (contract dim 1 of both).
        s = jax.lax.dot_general(q, k, (((1,), (1,)), ((), ())),
                                preferred_element_type=jnp.float32) * scale
        s = s + mask
        s = s - jnp.max(s, axis=-1, keepdims=True)
        # bf16 probabilities (VPU/EUP elementwise is the binding slot here);
        # row-sum kept in f32, approx reciprocal runs on the idle EUP slot.
        p = jnp.exp(s.astype(jnp.bfloat16))
        denom = jnp.sum(p.astype(jnp.float32), axis=-1, keepdims=True)
        inv = pl.reciprocal(denom, approx=True).astype(jnp.bfloat16)
        p = p * inv
        ctx = jnp.dot(p, v, preferred_element_type=jnp.float32)
        pending.append(ctx.astype(o_ref.dtype))
        # incremental, lane-aligned head-group stores: keeps live state small.
        if len(pending) == store_group:
            blk = pending[0] if store_group == 1 else jnp.concatenate(pending, axis=-1)
            start = (h + 1 - store_group) * dh
            o_ref[0, :, start:start + store_group * dh] = blk
            pending = []


def _pool_cls_kernel(x_ref, pw_ref, pb_ref, cw_ref, cb_ref, o_ref):
    pooled = jnp.tanh(jnp.dot(x_ref[...], pw_ref[...],
                              preferred_element_type=jnp.float32) + pb_ref[...])
    logits = jnp.dot(pooled.astype(cw_ref.dtype), cw_ref[...],
                     preferred_element_type=jnp.float32) + cb_ref[...]
    o_ref[...] = logits.astype(o_ref.dtype)


# ----------------------------------------------------------------------------
# pallas_call wrappers
# ----------------------------------------------------------------------------
def matmul_bias_act(x, w, b, activation="none", out_dtype=jnp.bfloat16,
                    tm=512, tn=4096, tk=4096):
    M, K = x.shape
    _, N = w.shape
    tm = _tile(M, tm, 8)
    tn = _tile(N, tn, 128)
    tk = _tile(K, tk, 128)

    if tk == K:
        # Single K block: no accumulator scratch, no predicated branches.
        # With tn == N (typical for BERT-sized weights) the weight block index is
        # constant -> weight DMA'd from HBM once per call.
        return pl.pallas_call(
            functools.partial(_matmul_nok_kernel, activation=activation),
            out_shape=jax.ShapeDtypeStruct((M, N), out_dtype),
            grid=(M // tm, N // tn),
            in_specs=[pl.BlockSpec((tm, K), lambda i, j: (i, 0)),
                      pl.BlockSpec((K, tn), lambda i, j: (0, j)),
                      pl.BlockSpec((1, tn), lambda i, j: (0, j))],
            out_specs=pl.BlockSpec((tm, tn), lambda i, j: (i, j)),
            compiler_params=pltpu.CompilerParams(
                dimension_semantics=("parallel", "parallel"),
                vmem_limit_bytes=_VMEM_LIMIT),
        )(x, w, b)

    # Fallback: K too large to keep in one block.
    return pl.pallas_call(
        functools.partial(_matmul_kernel, activation=activation),
        out_shape=jax.ShapeDtypeStruct((M, N), out_dtype),
        grid_spec=pltpu.PrefetchScalarGridSpec(
            num_scalar_prefetch=0,
            grid=(M // tm, N // tn, K // tk),
            in_specs=[pl.BlockSpec((tm, tk), lambda i, j, k: (i, k)),
                      pl.BlockSpec((tk, tn), lambda i, j, k: (k, j)),
                      pl.BlockSpec((1, tn), lambda i, j, k: (0, j))],
            out_specs=pl.BlockSpec((tm, tn), lambda i, j, k: (i, j)),
            scratch_shapes=[pltpu.VMEM((tm, tn), jnp.float32)]),
        compiler_params=pltpu.CompilerParams(
            dimension_semantics=("parallel", "parallel", "arbitrary"),
            vmem_limit_bytes=_VMEM_LIMIT),
    )(x, w, b)


def matmul_bias_add_ln(x, w, b, residual, gamma, beta, eps=1e-12,
                       tm=512, tk=4096):
    """out = LayerNorm(x @ w + b + residual); N untiled (LN needs full rows)."""
    M, K = x.shape
    _, N = w.shape
    tm = _tile(M, tm, 8)
    tk = _tile(K, tk, 128)

    if tk == K:
        # Weight block index is constant across the row grid -> read from HBM once.
        return pl.pallas_call(
            functools.partial(_matmul_add_ln_nok_kernel, eps=eps),
            out_shape=jax.ShapeDtypeStruct((M, N), jnp.bfloat16),
            grid=(M // tm,),
            in_specs=[pl.BlockSpec((tm, K), lambda i: (i, 0)),
                      pl.BlockSpec((K, N), lambda i: (0, 0)),
                      pl.BlockSpec((1, N), lambda i: (0, 0)),
                      pl.BlockSpec((tm, N), lambda i: (i, 0)),
                      pl.BlockSpec((1, N), lambda i: (0, 0)),
                      pl.BlockSpec((1, N), lambda i: (0, 0))],
            out_specs=pl.BlockSpec((tm, N), lambda i: (i, 0)),
            compiler_params=pltpu.CompilerParams(
                dimension_semantics=("parallel",),
                vmem_limit_bytes=_VMEM_LIMIT),
        )(x, w, b, residual, gamma, beta)

    return pl.pallas_call(
        functools.partial(_matmul_add_ln_kernel, eps=eps),
        out_shape=jax.ShapeDtypeStruct((M, N), jnp.bfloat16),
        grid_spec=pltpu.PrefetchScalarGridSpec(
            num_scalar_prefetch=0,
            grid=(M // tm, K // tk),
            in_specs=[pl.BlockSpec((tm, tk), lambda i, k: (i, k)),
                      pl.BlockSpec((tk, N), lambda i, k: (k, 0)),
                      pl.BlockSpec((1, N), lambda i, k: (0, 0)),
                      pl.BlockSpec((tm, N), lambda i, k: (i, 0)),
                      pl.BlockSpec((1, N), lambda i, k: (0, 0)),
                      pl.BlockSpec((1, N), lambda i, k: (0, 0))],
            out_specs=pl.BlockSpec((tm, N), lambda i, k: (i, 0)),
            scratch_shapes=[pltpu.VMEM((tm, N), jnp.float32)]),
        compiler_params=pltpu.CompilerParams(
            dimension_semantics=("parallel", "arbitrary"),
            vmem_limit_bytes=_VMEM_LIMIT),
    )(x, w, b, residual, gamma, beta)


def layernorm(x, g, b, eps=1e-12, tm=1024):
    M, H = x.shape
    tm = _tile(M, tm, 8)
    return pl.pallas_call(
        functools.partial(_layernorm_kernel, eps=eps),
        out_shape=jax.ShapeDtypeStruct((M, H), jnp.bfloat16),
        grid=(M // tm,),
        in_specs=[pl.BlockSpec((tm, H), lambda i: (i, 0)),
                  pl.BlockSpec((1, H), lambda i: (0, 0)),
                  pl.BlockSpec((1, H), lambda i: (0, 0))],
        out_specs=pl.BlockSpec((tm, H), lambda i: (i, 0)),
        compiler_params=pltpu.CompilerParams(
            dimension_semantics=("parallel",),
            vmem_limit_bytes=_VMEM_LIMIT),
    )(x, g, b)


def attention(qkv, addm, heads, head_dim, hidden, scale, tq=256):
    """qkv: (B, S, 3H) fused projections; addm: (B, 1, S) additive key mask."""
    B, S, H3 = qkv.shape
    tq = _tile(S, tq, 8)
    # Smallest group of heads whose combined width is 128-lane aligned (unmasked stores).
    store_group = heads
    for g in range(1, heads + 1):
        if heads % g == 0 and (g * head_dim) % 128 == 0:
            store_group = g
            break
    # TODO(synk): no KV-block (flash-style) loop; full-S scores per head. Fine for S<=~2k.
    return pl.pallas_call(
        functools.partial(_attn_kernel, heads=heads, head_dim=head_dim,
                          hidden=hidden, scale=scale, store_group=store_group),
        out_shape=jax.ShapeDtypeStruct((B, S, hidden), jnp.bfloat16),
        grid=(B, S // tq),
        in_specs=[pl.BlockSpec((1, tq, H3), lambda b, qi: (b, qi, 0)),   # query rows
                  pl.BlockSpec((1, S, H3), lambda b, qi: (b, 0, 0)),     # K/V, resident over qi
                  pl.BlockSpec((1, 1, S), lambda b, qi: (b, 0, 0))],
        out_specs=pl.BlockSpec((1, tq, hidden), lambda b, qi: (b, qi, 0)),
        compiler_params=pltpu.CompilerParams(
            dimension_semantics=("parallel", "parallel"),
            vmem_limit_bytes=_VMEM_LIMIT),
    )(qkv, qkv, addm)


def pool_classify(cls, pw, pb, cw, cb):
    """Fused pooler (tanh) + classifier; tiny M so one kernel, one grid step."""
    B, H = cls.shape
    NP = cw.shape[1]
    return pl.pallas_call(
        _pool_cls_kernel,
        out_shape=jax.ShapeDtypeStruct((B, NP), jnp.float32),
        grid=(1,),
        in_specs=[pl.BlockSpec((B, H), lambda i: (0, 0)),
                  pl.BlockSpec((H, H), lambda i: (0, 0)),
                  pl.BlockSpec((1, H), lambda i: (0, 0)),
                  pl.BlockSpec((H, NP), lambda i: (0, 0)),
                  pl.BlockSpec((1, NP), lambda i: (0, 0))],
        out_specs=pl.BlockSpec((B, NP), lambda i: (0, 0)),
        compiler_params=pltpu.CompilerParams(vmem_limit_bytes=_VMEM_LIMIT),
    )(cls, pw, pb, cw, cb)


# ----------------------------------------------------------------------------
# Parameters (deterministic synthetic init; weights bf16, bias/LN params f32)
# ----------------------------------------------------------------------------
def init_params(key, vocab, max_pos, hidden, heads, ffn, layers, labels):
    ks = iter(jax.random.split(key, 8 + layers * 8))
    s = 0.02

    def w(shape, dtype=jnp.bfloat16):
        return (s * jax.random.normal(next(ks), shape)).astype(dtype)

    def zeros(shape):
        return jnp.zeros(shape, jnp.float32)

    def ones(shape):
        return jnp.ones(shape, jnp.float32)

    labels_pad = ((labels + 127) // 128) * 128           # lane-dense classifier output
    cls_w = jnp.zeros((hidden, labels_pad), jnp.bfloat16)
    cls_w = cls_w.at[:, :labels].set(w((hidden, labels)))

    params = {
        "tok_emb": w((vocab, hidden), jnp.float32),
        "pos_emb": w((max_pos, hidden), jnp.float32),
        "emb_ln_g": ones((1, hidden)),
        "emb_ln_b": zeros((1, hidden)),
        "layers": [],
        "pool_w": w((hidden, hidden)),
        "pool_b": zeros((1, hidden)),
        "cls_w": cls_w,
        "cls_b": zeros((1, labels_pad)),
        "cfg": dict(hidden=hidden, heads=heads, head_dim=hidden // heads,
                    ffn=ffn, layers=layers, labels=labels,
                    labels_pad=labels_pad),
    }
    for _ in range(layers):
        params["layers"].append({
            "w_qkv": w((hidden, 3 * hidden)), "b_qkv": zeros((1, 3 * hidden)),
            "wo": w((hidden, hidden)), "bo": zeros((1, hidden)),
            "ln1_g": ones((1, hidden)), "ln1_b": zeros((1, hidden)),
            "w1": w((hidden, ffn)), "b1": zeros((1, ffn)),
            "w2": w((ffn, hidden)), "b2": zeros((1, hidden)),
            "ln2_g": ones((1, hidden)), "ln2_b": zeros((1, hidden)),
        })
    return params


# ----------------------------------------------------------------------------
# Forward pass
# ----------------------------------------------------------------------------
def forward(params, input_ids, attention_mask):
    cfg = params["cfg"]
    B, S = input_ids.shape
    H, NH, DH = cfg["hidden"], cfg["heads"], cfg["head_dim"]

    # TODO(synk): embedding gather kept as plain JAX indexing (not a Pallas DMA-gather kernel).
    x = params["tok_emb"][input_ids] + params["pos_emb"][:S][None, :, :]  # (B,S,H) f32
    x = x.reshape(B * S, H).astype(jnp.bfloat16)
    x = layernorm(x, params["emb_ln_g"], params["emb_ln_b"])              # (B*S,H) bf16

    # additive key mask, (B, 1, S)
    addm = (1.0 - attention_mask.astype(jnp.float32))[:, None, :] * -1e9

    scale = 1.0 / float(DH) ** 0.5
    for lyr in params["layers"]:
        # fused Q|K|V projection: one matmul, X read once, weight resident
        qkv = matmul_bias_act(x, lyr["w_qkv"], lyr["b_qkv"])              # (B*S, 3H) bf16
        ctx = attention(qkv.reshape(B, S, 3 * H), addm, NH, DH, H, scale) # (B, S, H) bf16
        ctx = ctx.reshape(B * S, H)
        # attention output projection + residual + LayerNorm, fused
        x = matmul_bias_add_ln(ctx, lyr["wo"], lyr["bo"], x,
                               lyr["ln1_g"], lyr["ln1_b"])
        # FFN
        ff = matmul_bias_act(x, lyr["w1"], lyr["b1"], activation="gelu")  # (B*S, FFN)
        x = matmul_bias_add_ln(ff, lyr["w2"], lyr["b2"], x,
                               lyr["ln2_g"], lyr["ln2_b"])

    cls = x.reshape(B, S, H)[:, 0, :]                                     # (B, H) bf16
    logits = pool_classify(cls, params["pool_w"], params["pool_b"],
                           params["cls_w"], params["cls_b"])              # (B, labels_pad) f32
    return logits[:, :cfg["labels"]]


# ----------------------------------------------------------------------------
if __name__ == "__main__":
    # Small but lane-friendly shapes: head_dim = 256/2 = 128 keeps head slices vreg-aligned.
    B, S = 2, 8
    VOCAB, MAXPOS = 100, 16
    HID, HEADS, FFN, LAYERS, LABELS = 256, 2, 512, 2, 3

    key = jax.random.PRNGKey(0)
    pkey, ikey = jax.random.split(key)

    params = init_params(pkey, VOCAB, MAXPOS, HID, HEADS, FFN, LAYERS, LABELS)

    input_ids = jax.random.randint(ikey, (B, S), 0, VOCAB, dtype=jnp.int32)
    attention_mask = jnp.array(
        [[1, 1, 1, 1, 1, 1, 1, 1],
         [1, 1, 1, 1, 1, 1, 0, 0]], dtype=jnp.float32)

    logits = forward(params, input_ids, attention_mask)
    logits = jax.block_until_ready(logits)

    assert logits.shape == (B, LABELS)
    assert bool(jnp.all(jnp.isfinite(logits)))
    print("KERNEL_OK")
</pallas_src>

<mosaic_0001>
module attributes {stable_mosaic.version = 11 : i64} {
  func.func @_layernorm_kernel(%arg0: i32, %arg1: memref<16x256xbf16, #tpu.memory_space<vmem>>, %arg2: memref<1x256xf32, #tpu.memory_space<vmem>>, %arg3: memref<1x256xf32, #tpu.memory_space<vmem>>, %arg4: memref<16x256xbf16, #tpu.memory_space<vmem>>) attributes {dimension_semantics = [#tpu.dimension_semantics<parallel>], iteration_bounds = array<i64: 1>, scalar_prefetch = 0 : i64, scratch_operands = 0 : i64, tpu.core_type = #tpu.core_type<tc>, window_params = [{transform_indices = @transform_0, window_bounds = array<i64: 16, 256>}, {pipeline_mode = #tpu.pipeline_mode<synchronous>, transform_indices = @transform_1, window_bounds = array<i64: 1, 256>}, {pipeline_mode = #tpu.pipeline_mode<synchronous>, transform_indices = @transform_2, window_bounds = array<i64: 1, 256>}, {transform_indices = @transform_3, window_bounds = array<i64: 16, 256>}]} {
    %c0 = arith.constant 0 : index
    %c0_0 = arith.constant 0 : index
    %0 = vector.load %arg1[%c0, %c0_0] : memref<16x256xbf16, #tpu.memory_space<vmem>>, vector<16x256xbf16>
    %1 = arith.extf %0 : vector<16x256xbf16> to vector<16x256xf32>
    %cst = arith.constant dense<0.000000e+00> : vector<16xf32>
    %2 = vector.multi_reduction <add>, %1, %cst [1] : vector<16x256xf32> to vector<16xf32>
    %3 = vector.shape_cast %2 : vector<16xf32> to vector<16x1xf32>
    %cst_1 = arith.constant 2.560000e+02 : f32
    %4 = vector.broadcast %cst_1 : f32 to vector<16x1xf32>
    %5 = arith.divf %3, %4 : vector<16x1xf32>
    %6 = vector.broadcast %5 : vector<16x1xf32> to vector<16x256xf32>
    %7 = arith.subf %1, %6 : vector<16x256xf32>
    %8 = arith.mulf %7, %7 : vector<16x256xf32>
    %cst_2 = arith.constant dense<0.000000e+00> : vector<16xf32>
    %9 = vector.multi_reduction <add>, %8, %cst_2 [1] : vector<16x256xf32> to vector<16xf32>
    %10 = vector.shape_cast %9 : vector<16xf32> to vector<16x1xf32>
    %cst_3 = arith.constant 2.560000e+02 : f32
    %11 = vector.broadcast %cst_3 : f32 to vector<16x1xf32>
    %12 = arith.divf %10, %11 : vector<16x1xf32>
    %cst_4 = arith.constant 9.99999996E-13 : f32
    %13 = vector.broadcast %cst_4 : f32 to vector<16x1xf32>
    %14 = arith.addf %12, %13 : vector<16x1xf32>
    %15 = math.rsqrt %14 : vector<16x1xf32>
    %16 = vector.broadcast %15 : vector<16x1xf32> to vector<16x256xf32>
    %17 = arith.mulf %7, %16 : vector<16x256xf32>
    %c0_5 = arith.constant 0 : index
    %c0_6 = arith.constant 0 : index
    %18 = vector.load %arg2[%c0_5, %c0_6] : memref<1x256xf32, #tpu.memory_space<vmem>>, vector<1x256xf32>
    %19 = vector.broadcast %18 : vector<1x256xf32> to vector<16x256xf32>
    %20 = arith.mulf %17, %19 : vector<16x256xf32>
    %c0_7 = arith.constant 0 : index
    %c0_8 = arith.constant 0 : index
    %21 = vector.load %arg3[%c0_7, %c0_8] : memref<1x256xf32, #tpu.memory_space<vmem>>, vector<1x256xf32>
    %22 = vector.broadcast %21 : vector<1x256xf32> to vector<16x256xf32>
    %23 = arith.addf %20, %22 : vector<16x256xf32>
    %24 = arith.truncf %23 : vector<16x256xf32> to vector<16x256xbf16>
    %c0_9 = arith.constant 0 : index
    %c0_10 = arith.constant 0 : index
    %25 = vector.load %arg4[%c0_9, %c0_10] : memref<16x256xbf16, #tpu.memory_space<vmem>>, vector<16x256xbf16>
    tpu.vector_store %arg4[%c0_9, %c0_10], %24 {strides = array<i32>} : memref<16x256xbf16, #tpu.memory_space<vmem>>, vector<16x256xbf16>,
    return
  }
  func.func @transform_0(%arg0: i32) -> (i32, i32) {
    %c0_i32 = arith.constant 0 : i32
    %c0_i32_0 = arith.constant 0 : i32
    return %arg0, %c0_i32 : i32, i32
  }
  func.func @transform_1(%arg0: i32) -> (i32, i32) {
    %c0_i32 = arith.constant 0 : i32
    %c0_i32_0 = arith.constant 0 : i32
    %c0_i32_1 = arith.constant 0 : i32
    return %c0_i32, %c0_i32_0 : i32, i32
  }
  func.func @transform_2(%arg0: i32) -> (i32, i32) {
    %c0_i32 = arith.constant 0 : i32
    %c0_i32_0 = arith.constant 0 : i32
    %c0_i32_1 = arith.constant 0 : i32
    return %c0_i32, %c0_i32_0 : i32, i32
  }
  func.func @transform_3(%arg0: i32) -> (i32, i32) {
    %c0_i32 = arith.constant 0 : i32
    %c0_i32_0 = arith.constant 0 : i32
    return %arg0, %c0_i32 : i32, i32
  }
}

</mosaic_0001>

<bundles_post_ra>
// kernel: tpu_custom_call.1
= control target key start
LH: loop header
LB: loop body
LE: loop exit
PB: predicated region body
PF: predicated region fallthrough
CT: control target
= control target key end

     0   :  { %8 = vsyncpa [#allocation3], 0  ;;  %s325_s0 = inlined_call_operand.hbm [shape: bf16[16,256], index: 0, kind: input, shape index: {}]   ;;  %s326_s1 = inlined_call_operand.hbm [shape: f32[1,256], index: 1, kind: input, shape index: {}]   ;;  %s327_s2 = inlined_call_operand.hbm [shape: f32[1,256], index: 2, kind: input, shape index: {}]   ;;  %s328_s3 = inlined_call_operand.hbm [shape: bf16[16,256], index: 3, kind: output, shape index: {}]  }
   0x1   :  { %9 = vsyncpa [#allocation6], 0  ;;  %s29_s14 = sshll.u32 %s326_s1, 4  ;;  %s30_s14 = int_to_ptr.hbm [resolvable:$true] %s29_s14 }
   0x2   :  { %10 = vsyncpa [#allocation4], 0  ;;  %s280_s15 = smov [#allocation5]   ;;  %s15_s19 = sshll.u32 %s325_s0, 4  ;;  %s16_s19 = int_to_ptr.hbm [resolvable:$true] %s15_s19 }
   0x3   :  { %s31_s16 = sshll.u32 %s280_s15, 4  ;;  %s281_s20 = smov [#allocation2]   ;;  %s32_s16 = int_to_ptr.vmem [resolvable:$true] %s31_s16 }
   0x4   :  { %34 = dma.hbm_to_vmem [thread:$0]  %s30_s14, 32, %s32_s16, [#allocation6]  }
   0x5   :  { %s17_s21 = sshll.u32 %s281_s20, 4  ;;  %s282_s22 = smov 128   ;;  %s18_s21 = int_to_ptr.vmem [resolvable:$true] %s17_s21 }
   0x6   :  { %s283_s23 = smov 8   ;;  %s40_s25 = sshll.u32 %s327_s2, 4  ;;  %s41_s25 = int_to_ptr.hbm [resolvable:$true] %s40_s25 }
   0x7   :  { %23 = dma.hbm_to_vmem [thread:$0]  %s16_s19, 256, %s18_s21, [#allocation3], %s282_s22, %s282_s22, %s283_s23  }
   0x8   :  { %s284_s26 = smov [#allocation7]  }
   0x9   :  { %s42_s27 = sshll.u32 %s284_s26, 4  ;;  %s43_s27 = int_to_ptr.vmem [resolvable:$true] %s42_s27 }
   0xa   :  { %45 = dma.hbm_to_vmem [thread:$0]  %s41_s25, 32, %s43_s27, [#allocation6]  }
   0xb   :  { %274 = dma.done.wait [#allocation3], 256  }
   0xc   :  { %275 = vsyncadd [#allocation3], 4294967040 }
   0xd   :  { %276 = dma.done.wait [#allocation6], 64  }
   0xe   :  { %277 = vsyncadd [#allocation6], 4294967232  ;;  %v58_v0 = vld [vmem:[#allocation2] sm:$0xff]  ;;  %v59_v3 = vld [vmem:[#allocation2 + $0x8] sm:$0xff]  ;;  %v285_v8 = vmov 256.0   ;;  %s286_s0 = smov [#allocation8]  }
   0xf   :  { %v60_v1 = vunpack.c.l.bf16 %v58_v0  ;;  %v61_v2 = vunpack.c.h.bf16 %v58_v0  ;;  %v62_v5 = vunpack.c.l.bf16 %v59_v3  ;;  %v63_v6 = vunpack.c.h.bf16 %v59_v3  ;;  %v121_v40 = vld [vmem:[#allocation5] sm:$0x3]  ;;  %v131_v44 = vld [vmem:[#allocation7] sm:$0x3]  ;;  %s149_s2 = sshll.u32 %s286_s0, 4  ;;  %s151_s30 = sshll.u32 %s328_s3, 4  ;;  %s150_s2 = int_to_ptr.vmem [resolvable:$true] %s149_s2  ;;  %s152_s30 = int_to_ptr.hbm [resolvable:$true] %s151_s30 }
  0x10   :  { %172 = vrcp.f32 %v285_v8  ;;  %v123_v45 = vperm.slane %v121_v40, 0  ;;  %v124_v46 = vperm.slane %v121_v40, 1  ;;  %v133_v51 = vperm.slane %v131_v44, 0 }
  0x11   :  { %v64_v4 = vadd.f32 %v61_v2, %v60_v1  ;;  %v67_v7 = vadd.f32 %v63_v6, %v62_v5  ;;  %v134_v52 = vperm.slane %v131_v44, 1 }
  0x13   :  { %65 = vadd.xlane.f32.xlu0 %v64_v4 }
  0x16   :  { %v173_v9 = vpop.eup %172 }
  0x17   :  { %v71_v10 = vmul.f32 256.0, %v173_v9  ;;  %vm75_vm0 = vweird.f32 %v173_v9 }
  0x19   :  { %v72_v11 = vsub.f32 1.0, %v71_v10 }
  0x1b   :  { %68 = vadd.xlane.f32.xlu0 %v67_v7  ;;  %v73_v12 = vmul.f32 %v173_v9, %v72_v11 }
  0x1d   :  { %v74_v13 = vadd.f32 %v173_v9, %v73_v12 }
  0x1f   :  { %v76_v14 = vsel %vm75_vm0, %v173_v9, %v74_v13 }
  0x86   :  { %v66_v15 = vpop.xlane.xlu0 %65 }
  0x87   :  { %v77_v16 = vmul.f32 %v76_v14, %v66_v15 }
  0x89   :  { %v79_v17 = vsub.f32 %v60_v1, %v77_v16  ;;  %v80_v18 = vsub.f32 %v61_v2, %v77_v16 }
  0x8b   :  { %v83_v19 = vmul.f32 %v79_v17, %v79_v17  ;;  %v84_v20 = vmul.f32 %v80_v18, %v80_v18 }
  0x8d   :  { %v87_v21 = vadd.f32 %v84_v20, %v83_v19 }
  0x8e   :  { %v69_v22 = vpop.xlane.xlu0 %68 }
  0x8f   :  { %v78_v23 = vmul.f32 %v76_v14, %v69_v22  ;;  %88 = vadd.xlane.f32.xlu1 %v87_v21 }
  0x91   :  { %v81_v24 = vsub.f32 %v62_v5, %v78_v23  ;;  %v82_v25 = vsub.f32 %v63_v6, %v78_v23 }
  0x93   :  { %v85_v26 = vmul.f32 %v81_v24, %v81_v24  ;;  %v86_v27 = vmul.f32 %v82_v25, %v82_v25 }
  0x95   :  { %v90_v28 = vadd.f32 %v86_v27, %v85_v26 }
  0x97   :  { %91 = vadd.xlane.f32.xlu1 %v90_v28 }
 0x102   :  { %v89_v29 = vpop.xlane.xlu1 %88 }
 0x103   :  { %v93_v30 = vmul.f32 %v89_v29, %v76_v14 }
 0x105   :  { %v95_v31 = vadd.f32 1e-12, %v93_v30 }
 0x107   :  { %174 = vrsqrt.f32 %v95_v31  ;;  %vm103_vm2 = vweird.f32 %v95_v31 }
 0x10a   :  { %v92_v32 = vpop.xlane.xlu1 %91 }
 0x10b   :  { %v94_v33 = vmul.f32 %v92_v32, %v76_v14 }
 0x10d   :  { %v175_v34 = vpop.eup %174  ;;  %v96_v35 = vadd.f32 1e-12, %v94_v33 }
 0x10e   :  { %v98_v36 = vmul.f32 %v175_v34, %v95_v31  ;;  %vm104_vm1 = vweird.f32 %v175_v34 }
 0x10f   :  { %176 = vrsqrt.f32 %v96_v35  ;;  %vm105_vm3 = vmor %vm103_vm2, %vm104_vm1  ;;  %vm113_vm5 = vweird.f32 %v96_v35 }
 0x110   :  { %v99_v37 = vmul.f32 %v175_v34, %v98_v36 }
 0x112   :  { %v100_v38 = vmul.f32 0.5, %v99_v37 }
 0x114   :  { %v101_v39 = vsub.f32 1.5, %v100_v38 }
 0x115   :  { %v177_v41 = vpop.eup %176 }
 0x116   :  { %v102_v42 = vmul.f32 %v175_v34, %v101_v39  ;;  %v108_v43 = vmul.f32 %v177_v41, %v96_v35  ;;  %vm114_vm4 = vweird.f32 %v177_v41 }
 0x117   :  { %vm115_vm6 = vmor %vm113_vm5, %vm114_vm4 }
 0x118   :  { %v106_v47 = vsel %vm105_vm3, %v175_v34, %v102_v42  ;;  %v109_v48 = vmul.f32 %v177_v41, %v108_v43 }
 0x119   :  { %v117_v49 = vmul.f32 %v106_v47, %v79_v17  ;;  %v118_v50 = vmul.f32 %v106_v47, %v80_v18 }
 0x11a   :  { %v110_v53 = vmul.f32 0.5, %v109_v48 }
 0x11b   :  { %v127_v54 = vmul.f32 %v123_v45, %v117_v49  ;;  %v128_v55 = vmul.f32 %v124_v46, %v118_v50 }
 0x11c   :  { %v111_v56 = vsub.f32 1.5, %v110_v53 }
 0x11d   :  { %v137_v57 = vadd.f32 %v133_v51, %v127_v54  ;;  %v138_v58 = vadd.f32 %v134_v52, %v128_v55 }
 0x11e   :  { %v112_v59 = vmul.f32 %v177_v41, %v111_v56 }
 0x11f   :  { %v141_v60 = vpack.c.bf16 %v138_v58, %v137_v57 }
 0x120   :  { %v116_v61 = vsel %vm115_vm6, %v177_v41, %v112_v59 }
 0x121   :  { %v119_v62 = vmul.f32 %v116_v61, %v81_v24  ;;  %v120_v63 = vmul.f32 %v116_v61, %v82_v25  ;;  %143 = vst [vmem:[#allocation8] sm:$0xff] %v141_v60 }
 0x123   :  { %v129_v0 = vmul.f32 %v123_v45, %v119_v62  ;;  %v130_v1 = vmul.f32 %v124_v46, %v120_v63 }
 0x125   :  { %v139_v2 = vadd.f32 %v133_v51, %v129_v0  ;;  %v140_v3 = vadd.f32 %v134_v52, %v130_v1 }
 0x127   :  { %v142_v4 = vpack.c.bf16 %v140_v3, %v139_v2 }
 0x129   :  { %144 = vst [vmem:[#allocation8 + $0x8] sm:$0xff] %v142_v4 }
 0x12a   :  { %157 = dma.vmem_to_hbm [thread:$0]  %s150_s2, 256, %s152_s30, [#allocation4], %s282_s22, %s282_s22, %s283_s23  }
 0x12b   :  { %278 = dma.done.wait [#allocation4], 256  }
 0x12c   :  { %279 = vsyncadd [#allocation4], 4294967040 }
 0x12d   :  { %162 = vsyncpa [#allocation3], 1 }
 0x12e   :  { %163 = vsyncpa [#allocation6], 1 }
 0x12f   :  { %164 = vsyncpa [#allocation4], 1 }

</bundles_post_ra>
